<compile_context>
chip_gen: v7x
topology: tpu7x:2x2x1
jax: 0.10.0
libtpu: 0.0.40
codegen_flags: <defaults>
</compile_context>

<pallas_src>
import functools

import jax
import jax.numpy as jnp
from jax.experimental import pallas as pl
from jax.experimental.pallas import tpu as pltpu


def _lstm_decoder_kernel(x_ref, h_ref, c_ref,
                         w_ref, b_ref, w_fc_ref, b_fc_ref,
                         y_ref, h_out_ref, c_out_ref, *, hidden_size):
    H = hidden_size
    x = x_ref[...]            # (B, D)
    h = h_ref[...]            # (B, H)
    c = c_ref[...]            # (B, H)

    # Single fused gate matmul: (B, D+H) @ (D+H, 4H) -> (B, 4H)
    xh = jnp.concatenate([x, h], axis=-1)
    gates = jnp.dot(xh, w_ref[...], preferred_element_type=jnp.float32) + b_ref[...]

    # Two full-vreg transcendental passes instead of four sub-vreg ones.
    sig = jax.nn.sigmoid(gates)
    tnh = jnp.tanh(gates)
    i_g = sig[:, 0 * H:1 * H]
    f_g = sig[:, 1 * H:2 * H]
    g_g = tnh[:, 2 * H:3 * H]
    o_g = sig[:, 3 * H:4 * H]

    c_new = f_g * c + i_g * g_g
    h_new = o_g * jnp.tanh(c_new)

    c_out_ref[...] = c_new.astype(c_out_ref.dtype)
    h_out_ref[...] = h_new.astype(h_out_ref.dtype)

    # fc(hidden -> 1) + sigmoid, on the VPU/XLU (no 1-column MXU matmul).
    logits = jnp.sum(h_new * w_fc_ref[...], axis=-1, keepdims=True) + b_fc_ref[...]
    y_ref[...] = jax.nn.sigmoid(logits).astype(y_ref.dtype)


def prepare_params(params):
    """One-time weight prep (hoisted out of the per-call path)."""
    w_stacked = jnp.concatenate(
        [params["w_ih"].T, params["w_hh"].T], axis=0).astype(jnp.float32)   # (D+H, 4H)
    b = (params["b_ih"] + params["b_hh"]).reshape(1, -1).astype(jnp.float32)  # (1, 4H)
    w_fc_row = params["w_fc"].reshape(1, -1).astype(jnp.float32)              # (1, H)
    b_fc = params["b_fc"].reshape(1, 1).astype(jnp.float32)                   # (1, 1)
    return {"w": w_stacked, "b": b, "w_fc": w_fc_row, "b_fc": b_fc}


@jax.jit
def raw_decoder_forward(decoder_input, h, c, prepped):
    """decoder_input: (B, D); h, c: (1, B, H). Returns (y (B,1), h_out (1,B,H), c_out (1,B,H))."""
    B, _ = decoder_input.shape
    H = h.shape[-1]

    h2 = h[0]   # (B, H)
    c2 = c[0]   # (B, H)

    vmem = pl.BlockSpec(memory_space=pltpu.MemorySpace.VMEM)
    kernel = functools.partial(_lstm_decoder_kernel, hidden_size=H)

    y, h_out, c_out = pl.pallas_call(
        kernel,
        out_shape=(
            jax.ShapeDtypeStruct((B, 1), jnp.float32),
            jax.ShapeDtypeStruct((B, H), jnp.float32),
            jax.ShapeDtypeStruct((B, H), jnp.float32),
        ),
        in_specs=[vmem] * 7,
        out_specs=(vmem, vmem, vmem),
        # Recurrent state updated in place: h2 -> h_out, c2 -> c_out.
        input_output_aliases={1: 1, 2: 2},
    )(decoder_input, h2, c2, prepped["w"], prepped["b"], prepped["w_fc"], prepped["b_fc"])

    return y, h_out[None], c_out[None]


def _init_params(key, input_dim, hidden_size):
    """Deterministic synthetic parameters matching nn.LSTM / nn.Linear shapes."""
    k = jax.random.split(key, 6)
    scale = 1.0 / jnp.sqrt(hidden_size)
    return {
        "w_ih": jax.random.uniform(k[0], (4 * hidden_size, input_dim), jnp.float32, -scale, scale),
        "w_hh": jax.random.uniform(k[1], (4 * hidden_size, hidden_size), jnp.float32, -scale, scale),
        "b_ih": jax.random.uniform(k[2], (4 * hidden_size,), jnp.float32, -scale, scale),
        "b_hh": jax.random.uniform(k[3], (4 * hidden_size,), jnp.float32, -scale, scale),
        "w_fc": jax.random.uniform(k[4], (1, hidden_size), jnp.float32, -scale, scale),
        "b_fc": jax.random.uniform(k[5], (1,), jnp.float32, -scale, scale),
    }


def _reference(decoder_input, h, c, params):
    """Pure-JAX reference of the PyTorch forward (for sanity checking)."""
    H = h.shape[-1]
    gates = (decoder_input @ params["w_ih"].T + params["b_ih"]
             + h[0] @ params["w_hh"].T + params["b_hh"])
    i_g = jax.nn.sigmoid(gates[:, 0 * H:1 * H])
    f_g = jax.nn.sigmoid(gates[:, 1 * H:2 * H])
    g_g = jnp.tanh(gates[:, 2 * H:3 * H])
    o_g = jax.nn.sigmoid(gates[:, 3 * H:4 * H])
    c_new = f_g * c[0] + i_g * g_g
    h_new = o_g * jnp.tanh(c_new)
    y = jax.nn.sigmoid(h_new @ params["w_fc"].T + params["b_fc"])
    return y, h_new[None], c_new[None]


if __name__ == "__main__":
    # Small shapes implied by the module:
    #   input_dim = term_hidden_size + filters * len(n_grams)  (e.g. 16 + 8*2 = 32)
    #   hidden_size = 32, batch = 8
    B, D, H = 8, 32, 32

    key = jax.random.PRNGKey(0)
    k_x, k_h, k_c, k_p = jax.random.split(key, 4)

    decoder_input = jax.random.normal(k_x, (B, D), jnp.float32)
    h0 = jax.random.normal(k_h, (1, B, H), jnp.float32)
    c0 = jax.random.normal(k_c, (1, B, H), jnp.float32)
    params = _init_params(k_p, D, H)

    prepped = prepare_params(params)          # one-time weight prep
    jax.block_until_ready(prepped)

    y, h_out, c_out = raw_decoder_forward(decoder_input, h0, c0, prepped)
    jax.block_until_ready((y, h_out, c_out))

    y_ref, h_ref, c_ref = _reference(decoder_input, h0, c0, params)
    assert y.shape == (B, 1) and h_out.shape == (1, B, H) and c_out.shape == (1, B, H)
    assert jnp.allclose(y, y_ref, atol=1e-5)
    assert jnp.allclose(h_out, h_ref, atol=1e-5)
    assert jnp.allclose(c_out, c_ref, atol=1e-5)

    print("KERNEL_OK")
</pallas_src>

<mosaic_0001>
module attributes {stable_mosaic.version = 11 : i64} {
  func.func @_lstm_decoder_kernel(%arg0: memref<8x32xf32, #tpu.memory_space<vmem>>, %arg1: memref<8x32xf32, #tpu.memory_space<vmem>>, %arg2: memref<8x32xf32, #tpu.memory_space<vmem>>, %arg3: memref<64x128xf32, #tpu.memory_space<vmem>>, %arg4: memref<1x128xf32, #tpu.memory_space<vmem>>, %arg5: memref<1x32xf32, #tpu.memory_space<vmem>>, %arg6: memref<1x1xf32, #tpu.memory_space<vmem>>, %arg7: memref<8x1xf32, #tpu.memory_space<vmem>>, %arg8: memref<8x32xf32, #tpu.memory_space<vmem>>, %arg9: memref<8x32xf32, #tpu.memory_space<vmem>>) attributes {dimension_semantics = [], scalar_prefetch = 0 : i64, scratch_operands = 0 : i64, tpu.core_type = #tpu.core_type<tc>} {
    %c0 = arith.constant 0 : index
    %c0_0 = arith.constant 0 : index
    %0 = vector.load %arg0[%c0, %c0_0] : memref<8x32xf32, #tpu.memory_space<vmem>>, vector<8x32xf32>
    %c0_1 = arith.constant 0 : index
    %c0_2 = arith.constant 0 : index
    %1 = vector.load %arg1[%c0_1, %c0_2] : memref<8x32xf32, #tpu.memory_space<vmem>>, vector<8x32xf32>
    %c0_3 = arith.constant 0 : index
    %c0_4 = arith.constant 0 : index
    %2 = vector.load %arg2[%c0_3, %c0_4] : memref<8x32xf32, #tpu.memory_space<vmem>>, vector<8x32xf32>
    %3 = tpu.concatenate %0, %1 in 1 : vector<8x32xf32>, vector<8x32xf32> -> vector<8x64xf32>
    %c0_5 = arith.constant 0 : index
    %c0_6 = arith.constant 0 : index
    %4 = vector.load %arg3[%c0_5, %c0_6] : memref<64x128xf32, #tpu.memory_space<vmem>>, vector<64x128xf32>
    %cst = arith.constant dense<0.000000e+00> : vector<8x128xf32>
    %5 = tpu.matmul %3, %4, %cst {dimension_numbers = #tpu.dot_dimension_numbers<[1], [0], [0], [1], [0, 0, 1, 1], [], []>} : vector<8x64xf32>, vector<64x128xf32>, vector<8x128xf32> -> vector<8x128xf32>
    %c0_7 = arith.constant 0 : index
    %c0_8 = arith.constant 0 : index
    %6 = vector.load %arg4[%c0_7, %c0_8] : memref<1x128xf32, #tpu.memory_space<vmem>>, vector<1x128xf32>
    %7 = vector.broadcast %6 : vector<1x128xf32> to vector<8x128xf32>
    %8 = arith.addf %5, %7 : vector<8x128xf32>
    %9 = arith.negf %8 : vector<8x128xf32>
    %10 = math.exp %9 : vector<8x128xf32>
    %cst_9 = arith.constant 1.000000e+00 : f32
    %11 = vector.broadcast %cst_9 : f32 to vector<8x128xf32>
    %12 = arith.addf %11, %10 : vector<8x128xf32>
    %13 = arith.divf %11, %12 : vector<8x128xf32>
    %14 = math.tanh %8 : vector<8x128xf32>
    %15 = vector.extract_strided_slice %13 {offsets = [0, 0], sizes = [8, 32], strides = [1, 1]} : vector<8x128xf32> to vector<8x32xf32>
    %16 = vector.extract_strided_slice %13 {offsets = [0, 32], sizes = [8, 32], strides = [1, 1]} : vector<8x128xf32> to vector<8x32xf32>
    %17 = vector.extract_strided_slice %14 {offsets = [0, 64], sizes = [8, 32], strides = [1, 1]} : vector<8x128xf32> to vector<8x32xf32>
    %18 = vector.extract_strided_slice %13 {offsets = [0, 96], sizes = [8, 32], strides = [1, 1]} : vector<8x128xf32> to vector<8x32xf32>
    %19 = arith.mulf %16, %2 : vector<8x32xf32>
    %20 = arith.mulf %15, %17 : vector<8x32xf32>
    %21 = arith.addf %19, %20 : vector<8x32xf32>
    %22 = math.tanh %21 : vector<8x32xf32>
    %23 = arith.mulf %18, %22 : vector<8x32xf32>
    %c0_10 = arith.constant 0 : index
    %c0_11 = arith.constant 0 : index
    %24 = vector.load %arg9[%c0_10, %c0_11] : memref<8x32xf32, #tpu.memory_space<vmem>>, vector<8x32xf32>
    tpu.vector_store %arg9[%c0_10, %c0_11], %21 {strides = array<i32>} : memref<8x32xf32, #tpu.memory_space<vmem>>, vector<8x32xf32>,
    %c0_12 = arith.constant 0 : index
    %c0_13 = arith.constant 0 : index
    %25 = vector.load %arg8[%c0_12, %c0_13] : memref<8x32xf32, #tpu.memory_space<vmem>>, vector<8x32xf32>
    tpu.vector_store %arg8[%c0_12, %c0_13], %23 {strides = array<i32>} : memref<8x32xf32, #tpu.memory_space<vmem>>, vector<8x32xf32>,
    %c0_14 = arith.constant 0 : index
    %c0_15 = arith.constant 0 : index
    %26 = vector.load %arg5[%c0_14, %c0_15] : memref<1x32xf32, #tpu.memory_space<vmem>>, vector<1x32xf32>
    %27 = vector.broadcast %26 : vector<1x32xf32> to vector<8x32xf32>
    %28 = arith.mulf %23, %27 : vector<8x32xf32>
    %cst_16 = arith.constant dense<0.000000e+00> : vector<8xf32>
    %29 = vector.multi_reduction <add>, %28, %cst_16 [1] : vector<8x32xf32> to vector<8xf32>
    %30 = vector.shape_cast %29 : vector<8xf32> to vector<8x1xf32>
    %c0_17 = arith.constant 0 : index
    %c0_18 = arith.constant 0 : index
    %31 = vector.load %arg6[%c0_17, %c0_18] : memref<1x1xf32, #tpu.memory_space<vmem>>, vector<1x1xf32>
    %32 = vector.broadcast %31 : vector<1x1xf32> to vector<8x1xf32>
    %33 = arith.addf %30, %32 : vector<8x1xf32>
    %34 = arith.negf %33 : vector<8x1xf32>
    %35 = math.exp %34 : vector<8x1xf32>
    %cst_19 = arith.constant 1.000000e+00 : f32
    %36 = vector.broadcast %cst_19 : f32 to vector<8x1xf32>
    %37 = arith.addf %36, %35 : vector<8x1xf32>
    %38 = arith.divf %36, %37 : vector<8x1xf32>
    %c0_20 = arith.constant 0 : index
    %c0_21 = arith.constant 0 : index
    %39 = vector.load %arg7[%c0_20, %c0_21] : memref<8x1xf32, #tpu.memory_space<vmem>>, vector<8x1xf32>
    tpu.vector_store %arg7[%c0_20, %c0_21], %38 {strides = array<i32>} : memref<8x1xf32, #tpu.memory_space<vmem>>, vector<8x1xf32>,
    return
  }
}

</mosaic_0001>

<bundles_post_ra>
// kernel: raw_decoder_forward.1
= control target key start
LH: loop header
LB: loop body
LE: loop exit
PB: predicated region body
PF: predicated region fallthrough
CT: control target
= control target key end

     0   :  { %s425_s0 = inlined_call_operand.vmem [shape: f32[8,32], index: 0, kind: input, shape index: {}]   ;;  %s426_s1 = inlined_call_operand.vmem [shape: f32[8,32], index: 1, kind: input, shape index: {}, may-alias: {1,8}]   ;;  %s427_s2 = inlined_call_operand.vmem [shape: f32[8,32], index: 2, kind: input, shape index: {}, may-alias: {2,9}]   ;;  %s428_s3 = inlined_call_operand.hbm [shape: f32[64,128], index: 3, kind: input, shape index: {}]   ;;  %s429_s4 = inlined_call_operand.vmem [shape: f32[1,128], index: 4, kind: input, shape index: {}]   ;;  %s430_s5 = inlined_call_operand.vmem [shape: f32[1,32], index: 5, kind: input, shape index: {}]   ;;  %s431_s6 = inlined_call_operand.<no memory space> [shape: f32[1,1], index: 6, kind: input, shape index: {}]   ;;  %s432_s7 = inlined_call_operand.vmem [shape: f32[8,1], index: 7, kind: output, shape index: {0}]   ;;  %s433_s8 = inlined_call_operand.vmem [shape: f32[8,32], index: 8, kind: output, shape index: {1}, may-alias: {1,8}]   ;;  %s434_s9 = inlined_call_operand.vmem [shape: f32[8,32], index: 9, kind: output, shape index: {2}, may-alias: {2,9}]  }
   0x1   :  { %v15_v0 = vstv %s431_s6 }
   0x2   :  { %16 = vst [vmem:[#allocation2] sm:$0x1] %v15_v0 }
   0x3   :  { %17 = vsyncpa [#allocation4], 0  ;;  %s318_s11 = smov [#allocation3]   ;;  %s294_s15 = scalar_lea.hbm %s428_s3, 1024 }
   0x4   :  { %s29_s12 = sshll.u32 %s318_s11, 4  ;;  %p295_p0 = scmp.ne.s32.totalorder %s428_s3, %s294_s15  ;;  %s30_s12 = int_to_ptr.vmem [resolvable:$true] %s29_s12 }
   0x5   :  { %p298_p1 = scmp.lt.u32.totalorder %s294_s15, %s428_s3 }
   0x7   :  { %p300_p2 = pnand %p298_p1, %p295_p0 }
   0x9   :  { %303 = shalt.err (!%p300_p2)
}
   0xa   :  { %s304_s6 = scalar_lea.vmem %s30_s12, 1024  ;;  %p309_p4 = scmp.lt.s32.totalorder %s30_s12, %s30_s12 }
   0xb   :  { %p305_p3 = scmp.ne.s32.totalorder %s30_s12, %s304_s6  ;;  %p310_p5 = scmp.lt.s32.totalorder %s304_s6, %s304_s6 }
   0xd   :  { %p311_p6 = por %p310_p5, %p309_p4 }
   0xf   :  { %p312_p7 = pnand %p311_p6, %p305_p3 }
  0x11   :  { %315 = shalt.err (!%p312_p7)
}
  0x12   :  { %s319_s20 = smov 128   ;;  %s320_s21 = smov 8  }
  0x13   :  { %35 = dma.hbm_to_vmem [thread:$0]  %s428_s3, 1024, %s30_s12, [#allocation4], %s319_s20, %s319_s20, %s320_s21  }
  0x14   :  { %316 = dma.done.wait [#allocation4], 1024  }
  0x15   :  { %317 = vsyncadd [#allocation4], 4294966272  ;;  %v321_v1 = vmov 0.0|0.0   ;;  %vm322_vm0 = vmmov 0   ;;  %v323_v2 = vmov 0.0   ;;  %v46_v3 = vld [vmem:[%s426_s1] sm:$0xff] }
  0x16   :  { %261 = vmatprep.subr.bf16.mxu0 %v321_v1  ;;  %258 = vmatprep.mubr.msk.f32.mxu0 %vm322_vm0, %v323_v2  ;;  %v54_v4 = vld [vmem:[#allocation3] sm:$0xff]  ;;  %v55_v5 = vld [vmem:[#allocation3 + $0x8] sm:$0xff]  ;;  %s324_s26 = smov 32   ;;  %v56_v7 = vld [vmem:[#allocation3 + $0x10] sm:$0xff]  ;;  %vm52_vm1 = vcmask 261120   ;;  %vm69_vm2 = vcmask 523264  }
  0x17   :  { %49 = vrot.lane.b32.xlu0 %v46_v3, %s324_s26  ;;  %v262_v6 = vpack.c.bf16 %v55_v5, %v54_v4  ;;  %v57_v8 = vld [vmem:[#allocation3 + $0x18] sm:$0xff]  ;;  %v58_v11 = vld [vmem:[#allocation3 + $0x20] sm:$0xff]  ;;  %v59_v12 = vld [vmem:[#allocation3 + $0x28] sm:$0xff]  ;;  %s325_s30 = smov 64   ;;  %vm212_vm3 = vcmask 7168  }
  0x18   :  { %v265_v9 = vpack.c.bf16 %v57_v8, %v56_v7  ;;  %v47_v10 = vld [vmem:[%s427_s2] sm:$0xff]  ;;  %v268_v13 = vpack.c.bf16 %v59_v12, %v58_v11  ;;  %v60_v14 = vld [vmem:[#allocation3 + $0x30] sm:$0xff] }
  0x19   :  { %263 = vmatpush3.bf16.msra.mxu0 %v262_v6  ;;  %151 = vrot.lane.b32.xlu1 %v47_v10, %s324_s26  ;;  %v61_v15 = vld [vmem:[#allocation3 + $0x38] sm:$0xff] }
  0x1a   :  { %264 = vmatprep.subr.bf16.mxu0 %v321_v1  ;;  %v271_v16 = vpack.c.bf16 %v61_v15, %v60_v14  ;;  %v45_v17 = vld [vmem:[%s425_s0] sm:$0xff] }
  0x1b   :  { %v227_v20 = vld [vmem:[%s429_s4] ss:$0 sm:$0xff]  ;;  %s326_s4 = smov 96  }
  0x1c   :  { %v230_v31 = vld [vmem:[%s430_s5] ss:$0 sm:$0xff] }
  0x1d   :  { %266 = vmatpush3.bf16.msra.mxu0 %v265_v9  ;;  %v231_v45 = vld [vmem:[#allocation2] ss:$0 sm:$0xff] }
  0x1e   :  { %267 = vmatprep.subr.bf16.mxu0 %v321_v1 }
  0x21   :  { %269 = vmatpush3.bf16.msra.mxu0 %v268_v13 }
  0x22   :  { %270 = vmatprep.subr.bf16.mxu0 %v321_v1 }
  0x25   :  { %272 = vmatpush3.bf16.msra.mxu0 %v271_v16 }
  0x89   :  { %v50_v18 = vpop.permute.xlu0 %49 }
  0x8a   :  { %v53_v19 = vsel %vm52_vm1, %v45_v17, %v50_v18 }
  0x8b   :  { %259 = vmatmul.mubr.msk.f32.vlgmr.msra.gmra.mrb[0].mxu0 %vm69_vm2, %v53_v19  ;;  %v152_v32 = vpop.permute.xlu1 %151 }
 0x15e   :  { %v139_v21 = vpop.f32.mrb[0].mxu0 }
 0x15f   :  { %v140_v22 = vadd.f32 %v227_v20, %v139_v21  ;;  %v260_v23 = vpop.f32.mrb[1].mxu0 }
 0x161   :  { %282 = vtanh.f32 %v140_v22  ;;  %v229_v25 = vmul.f32 -1.442695, %v140_v22 }
 0x163   :  { %284 = vpow2.f32 %v229_v25 }
 0x16b   :  { %v283_v24 = vpop.eup %282 }
 0x16c   :  { %156 = vrot.lane.b32.xlu0 %v283_v24, %s325_s30 }
 0x16d   :  { %v285_v26 = vpop.eup %284 }
 0x16e   :  { %v146_v27 = vadd.f32 1.0, %v285_v26 }
 0x170   :  { %286 = vrcp.f32 %v146_v27 }
 0x17a   :  { %v287_v28 = vpop.eup %286 }
 0x17b   :  { %v154_v33 = vmul.f32 %v287_v28, %v152_v32 }
 0x1de   :  { %v157_v29 = vpop.permute.xlu0 %156 }
 0x1df   :  { %v159_v30 = vmul.f32 %v287_v28, %v157_v29 }
 0x1e1   :  { %161 = vrot.lane.b32.xlu1 %v159_v30, %s324_s26 }
 0x1e5   :  { %187 = vrot.lane.b32.xlu1 %v230_v31, %s326_s4 }
 0x253   :  { %v162_v34 = vpop.permute.xlu1 %161 }
 0x254   :  { %v164_v35 = vadd.f32 %v162_v34, %v154_v33 }
 0x256   :  { %288 = vtanh.f32 %v164_v35 }
 0x257   :  { %v188_v38 = vpop.permute.xlu1 %187 }
 0x260   :  { %v289_v36 = vpop.eup %288 }
 0x261   :  { %167 = vrot.lane.b32.xlu0 %v289_v36, %s325_s30 }
 0x2d3   :  { %v168_v37 = vpop.permute.xlu0 %167 }
 0x2d4   :  { %v170_v39 = vmul.f32 %v287_v28, %v168_v37 }
 0x2d6   :  { %v190_v40 = vmul.f32 %v188_v38, %v170_v39 }
 0x2d8   :  { %192 = vrot.lane.b32.xlu0 %v190_v40, %s324_s26 }
 0x2dc   :  { %172 = vrot.lane.b32.xlu0 %v164_v35, %s326_s4 }
 0x2e0   :  { %177 = vrot.lane.b32.xlu0 %v170_v39, %s324_s26 }
 0x34a   :  { %v193_v41 = vpop.permute.xlu0 %192 }
 0x34b   :  { %v195_v42 = vsel %vm52_vm1, %v193_v41, 0.0 }
 0x34c   :  { %196 = vadd.xlane.f32.xlu1 %v195_v42 }
 0x34e   :  { %v173_v43 = vpop.permute.xlu0 %172 }
 0x34f   :  { %175 = vst.msk [vmem:[%s434_s9] sm:$0xff] %vm52_vm1, %v173_v43 }
 0x352   :  { %v178_v44 = vpop.permute.xlu0 %177 }
 0x353   :  { %180 = vst.msk [vmem:[%s433_s8] sm:$0xff] %vm52_vm1, %v178_v44 }
 0x3d9   :  { %v197_v46 = vpop.xlane.xlu1 %196 }
 0x3da   :  { %v205_v47 = vadd.f32 %v231_v45, %v197_v46 }
 0x3dc   :  { %v232_v48 = vmul.f32 -1.442695, %v205_v47 }
 0x3de   :  { %290 = vpow2.f32 %v232_v48 }
 0x3e8   :  { %v291_v49 = vpop.eup %290 }
 0x3e9   :  { %v209_v50 = vadd.f32 1.0, %v291_v49 }
 0x3eb   :  { %292 = vrcp.f32 %v209_v50 }
 0x3f5   :  { %v293_v51 = vpop.eup %292 }
 0x3f6   :  { %213 = vst.msk [vmem:[%s432_s7] sm:$0xff] %vm212_vm3, %v293_v51 }
 0x3f7   :  { %226 = vsyncpa [#allocation4], 1 }

</bundles_post_ra>
